<compile_context>
chip_gen: v5e
topology: v5e:2x2
jax: 0.10.0
libtpu: 0.0.40
codegen_flags: <defaults>
</compile_context>

<pallas_src>
import functools

import jax
import jax.numpy as jnp
from jax.experimental import pallas as pl
from jax.experimental.pallas import tpu as pltpu


def _round_up(x, m):
    return ((x + m - 1) // m) * m


def _mfg_ff_kernel(x_ref, wm_ref, ws_ref, wn_ref, bm_ref, bs_ref, bn_ref,
                   o_ref, acc_ref, *, use_bf16_mxu):
    k = pl.program_id(2)

    @pl.when(k == 0)
    def _():
        acc_ref[...] = jnp.zeros_like(acc_ref)

    # Reparameterized weight tile, already laid out (K, N): W = mean + sigma*noise
    w = wm_ref[...] + ws_ref[...] * wn_ref[...]
    x = x_ref[...]
    if use_bf16_mxu:  # static Python flag (bound via functools.partial)
        x = x.astype(jnp.bfloat16)
        w = w.astype(jnp.bfloat16)

    # MXU matmul with f32 accumulation, no in-kernel transpose.
    acc_ref[...] += jnp.dot(x, w, preferred_element_type=jnp.float32)

    @pl.when(k == pl.num_programs(2) - 1)
    def _():
        b = bm_ref[...] + bs_ref[...] * bn_ref[...]          # (1, tn)
        o_ref[...] = (acc_ref[...] + b).astype(o_ref.dtype)  # broadcast add


def mean_field_gaussian_feedforward(x, weights_mean, lweights_sigma, w_noise,
                                    bias_mean, lbias_sigma, b_noise,
                                    *, use_bf16_mxu=False,
                                    tm=128, tn=256, tk=512):
    """x: (B, in_features) f32; params per the PyTorch module; returns (B, out_features)."""
    B, K = x.shape
    N = weights_mean.shape[0]

    # Clamp tiles so tiny layers don't over-pad while keeping (8, 128) legality.
    tm = min(tm, _round_up(B, 8))
    tn = min(tn, _round_up(N, 128))
    tk = min(tk, _round_up(K, 128))

    Bp = _round_up(B, tm)
    Np = _round_up(N, tn)
    Kp = _round_up(K, tk)

    # Hoist the EUP exp out of the hot loop (sigma params are constant per step)
    # and pre-transpose weight-shaped params to (K, N): MXU-native layout.
    w_mean_t = weights_mean.T
    w_sigma_t = jnp.exp(lweights_sigma).T
    w_noise_t = w_noise.T
    b_sigma = jnp.exp(lbias_sigma)

    def pad2(a, rows, cols):
        return jnp.pad(a, ((0, rows - a.shape[0]), (0, cols - a.shape[1])))

    x_p = pad2(x, Bp, Kp)
    wm_p = pad2(w_mean_t, Kp, Np)
    ws_p = pad2(w_sigma_t, Kp, Np)
    wn_p = pad2(w_noise_t, Kp, Np)
    bm_p = pad2(bias_mean.reshape(1, N), 1, Np)
    bs_p = pad2(b_sigma.reshape(1, N), 1, Np)
    bn_p = pad2(b_noise.reshape(1, N), 1, Np)

    grid = (Bp // tm, Np // tn, Kp // tk)

    kernel = functools.partial(_mfg_ff_kernel, use_bf16_mxu=use_bf16_mxu)

    cost = pl.CostEstimate(
        flops=2 * Bp * Kp * Np,
        transcendentals=0,
        bytes_accessed=4 * (Bp * Kp + 3 * Kp * Np + 3 * Np + Bp * Np),
    )

    out_p = pl.pallas_call(
        kernel,
        out_shape=jax.ShapeDtypeStruct((Bp, Np), x.dtype),
        grid_spec=pltpu.PrefetchScalarGridSpec(
            num_scalar_prefetch=0,
            grid=grid,
            in_specs=[
                pl.BlockSpec((tm, tk), lambda i, j, k: (i, k)),   # x tile
                pl.BlockSpec((tk, tn), lambda i, j, k: (k, j)),   # W mean (K,N)
                pl.BlockSpec((tk, tn), lambda i, j, k: (k, j)),   # W sigma (K,N)
                pl.BlockSpec((tk, tn), lambda i, j, k: (k, j)),   # W noise (K,N)
                pl.BlockSpec((1, tn), lambda i, j, k: (0, j)),    # bias mean
                pl.BlockSpec((1, tn), lambda i, j, k: (0, j)),    # bias sigma
                pl.BlockSpec((1, tn), lambda i, j, k: (0, j)),    # bias noise
            ],
            out_specs=pl.BlockSpec((tm, tn), lambda i, j, k: (i, j)),
            scratch_shapes=[pltpu.VMEM((tm, tn), jnp.float32)],
        ),
        compiler_params=pltpu.CompilerParams(
            dimension_semantics=("parallel", "parallel", "arbitrary"),
            vmem_limit_bytes=64 * 1024 * 1024,
        ),
        cost_estimate=cost,
    )(x_p, wm_p, ws_p, wn_p, bm_p, bs_p, bn_p)

    return out_p[:B, :N]


def _reference(x, weights_mean, lweights_sigma, w_noise, bias_mean, lbias_sigma, b_noise):
    w = weights_mean + jnp.exp(lweights_sigma) * w_noise
    b = bias_mean + jnp.exp(lbias_sigma) * b_noise
    return x @ w.T + b


def _make_inputs(key, batch, in_features, out_features,
                 init_prior_sigma_scale=0.01, weight_prior_sigma=1.0, bias_prior_sigma=1.0):
    k_x, k_wm, k_bm, k_wn, k_bn = jax.random.split(key, 5)
    x = jax.random.normal(k_x, (batch, in_features), dtype=jnp.float32)
    weights_mean = jax.random.uniform(k_wm, (out_features, in_features),
                                      dtype=jnp.float32) - 0.5
    lweights_sigma = jnp.log(init_prior_sigma_scale * weight_prior_sigma
                             * jnp.ones((out_features, in_features), jnp.float32))
    bias_mean = jax.random.uniform(k_bm, (out_features,), dtype=jnp.float32) - 0.5
    lbias_sigma = jnp.log(init_prior_sigma_scale * bias_prior_sigma
                          * jnp.ones((out_features,), jnp.float32))
    w_noise = jax.random.normal(k_wn, (out_features, in_features), dtype=jnp.float32)
    b_noise = jax.random.normal(k_bn, (out_features,), dtype=jnp.float32)
    return x, weights_mean, lweights_sigma, w_noise, bias_mean, lbias_sigma, b_noise


if __name__ == "__main__":
    key = jax.random.PRNGKey(0)
    k_small, k_med = jax.random.split(key, 2)

    # --- Small shapes consistent with the module's forward (single tile). ---
    args_s = _make_inputs(k_small, batch=8, in_features=32, out_features=16)
    y_s = jax.block_until_ready(mean_field_gaussian_feedforward(*args_s))
    y_s_ref = _reference(*args_s)
    assert y_s.shape == (8, 16)
    assert jnp.allclose(y_s, y_s_ref, atol=1e-5, rtol=1e-5)

    # bf16-at-the-MXU path (v6e/v7x fast path); accumulation stays f32.
    y_s_bf16 = jax.block_until_ready(
        mean_field_gaussian_feedforward(*args_s, use_bf16_mxu=True))
    assert jnp.allclose(y_s_bf16, y_s_ref, atol=5e-2, rtol=5e-2)

    # --- Slightly larger, unaligned shapes to exercise the multi-tile grid
    #     (2 k-tiles -> accumulator path, 2 out-tiles, zero-padding). ---
    args_m = _make_inputs(k_med, batch=40, in_features=640, out_features=384)
    y_m = jax.block_until_ready(mean_field_gaussian_feedforward(*args_m))
    y_m_ref = _reference(*args_m)
    assert y_m.shape == (40, 384)
    assert jnp.allclose(y_m, y_m_ref, atol=1e-4, rtol=1e-4)

    print("KERNEL_OK")
</pallas_src>

<mosaic_0001>
module attributes {stable_mosaic.version = 11 : i64} {
  func.func @_mfg_ff_kernel(%arg0: i32, %arg1: i32, %arg2: i32, %arg3: memref<8x128xf32, #tpu.memory_space<vmem>>, %arg4: memref<128x128xf32, #tpu.memory_space<vmem>>, %arg5: memref<128x128xf32, #tpu.memory_space<vmem>>, %arg6: memref<128x128xf32, #tpu.memory_space<vmem>>, %arg7: memref<1x128xf32, #tpu.memory_space<vmem>>, %arg8: memref<1x128xf32, #tpu.memory_space<vmem>>, %arg9: memref<1x128xf32, #tpu.memory_space<vmem>>, %arg10: memref<8x128xf32, #tpu.memory_space<vmem>>, %arg11: memref<8x128xf32, #tpu.memory_space<vmem>>) attributes {dimension_semantics = [#tpu.dimension_semantics<parallel>, #tpu.dimension_semantics<parallel>, #tpu.dimension_semantics<arbitrary>], iteration_bounds = array<i64: 1, 1, 1>, scalar_prefetch = 0 : i64, scratch_operands = 1 : i64, tpu.core_type = #tpu.core_type<tc>, window_params = [{transform_indices = @transform_0, window_bounds = array<i64: 8, 128>}, {transform_indices = @transform_1, window_bounds = array<i64: 128, 128>}, {transform_indices = @transform_2, window_bounds = array<i64: 128, 128>}, {transform_indices = @transform_3, window_bounds = array<i64: 128, 128>}, {transform_indices = @transform_4, window_bounds = array<i64: 1, 128>}, {transform_indices = @transform_5, window_bounds = array<i64: 1, 128>}, {transform_indices = @transform_6, window_bounds = array<i64: 1, 128>}, {transform_indices = @transform_7, window_bounds = array<i64: 8, 128>}]} {
    %c0_i32 = arith.constant 0 : i32
    %0 = arith.cmpi eq, %arg2, %c0_i32 : i32
    %1 = arith.extui %0 : i1 to i32
    %c0_i32_0 = arith.constant 0 : i32
    %2 = arith.cmpi ne, %1, %c0_i32_0 : i32
    scf.if %2 {
      %cst_14 = arith.constant 0.000000e+00 : f32
      %16 = vector.broadcast %cst_14 : f32 to vector<8x128xf32>
      %c0_15 = arith.constant 0 : index
      %c0_16 = arith.constant 0 : index
      %17 = vector.load %arg11[%c0_15, %c0_16] : memref<8x128xf32, #tpu.memory_space<vmem>>, vector<8x128xf32>
      tpu.vector_store %arg11[%c0_15, %c0_16], %16 {strides = array<i32>} : memref<8x128xf32, #tpu.memory_space<vmem>>, vector<8x128xf32>,
    } else {
    }
    %c0 = arith.constant 0 : index
    %c0_1 = arith.constant 0 : index
    %3 = vector.load %arg4[%c0, %c0_1] : memref<128x128xf32, #tpu.memory_space<vmem>>, vector<128x128xf32>
    %c0_2 = arith.constant 0 : index
    %c0_3 = arith.constant 0 : index
    %4 = vector.load %arg5[%c0_2, %c0_3] : memref<128x128xf32, #tpu.memory_space<vmem>>, vector<128x128xf32>
    %c0_4 = arith.constant 0 : index
    %c0_5 = arith.constant 0 : index
    %5 = vector.load %arg6[%c0_4, %c0_5] : memref<128x128xf32, #tpu.memory_space<vmem>>, vector<128x128xf32>
    %6 = arith.mulf %4, %5 : vector<128x128xf32>
    %7 = arith.addf %3, %6 : vector<128x128xf32>
    %c0_6 = arith.constant 0 : index
    %c0_7 = arith.constant 0 : index
    %8 = vector.load %arg3[%c0_6, %c0_7] : memref<8x128xf32, #tpu.memory_space<vmem>>, vector<8x128xf32>
    %c0_8 = arith.constant 0 : index
    %c0_9 = arith.constant 0 : index
    %9 = vector.load %arg11[%c0_8, %c0_9] : memref<8x128xf32, #tpu.memory_space<vmem>>, vector<8x128xf32>
    %cst = arith.constant dense<0.000000e+00> : vector<8x128xf32>
    %10 = tpu.matmul %8, %7, %cst {dimension_numbers = #tpu.dot_dimension_numbers<[1], [0], [0], [1], [0, 0, 1, 1], [], []>} : vector<8x128xf32>, vector<128x128xf32>, vector<8x128xf32> -> vector<8x128xf32>
    %11 = arith.addf %9, %10 : vector<8x128xf32>
    %c0_10 = arith.constant 0 : index
    %c0_11 = arith.constant 0 : index
    %12 = vector.load %arg11[%c0_10, %c0_11] : memref<8x128xf32, #tpu.memory_space<vmem>>, vector<8x128xf32>
    tpu.vector_store %arg11[%c0_10, %c0_11], %11 {strides = array<i32>} : memref<8x128xf32, #tpu.memory_space<vmem>>, vector<8x128xf32>,
    %c0_i32_12 = arith.constant 0 : i32
    %13 = arith.cmpi eq, %arg2, %c0_i32_12 : i32
    %14 = arith.extui %13 : i1 to i32
    %c0_i32_13 = arith.constant 0 : i32
    %15 = arith.cmpi ne, %14, %c0_i32_13 : i32
    scf.if %15 {
      %c0_14 = arith.constant 0 : index
      %c0_15 = arith.constant 0 : index
      %16 = vector.load %arg7[%c0_14, %c0_15] : memref<1x128xf32, #tpu.memory_space<vmem>>, vector<1x128xf32>
      %c0_16 = arith.constant 0 : index
      %c0_17 = arith.constant 0 : index
      %17 = vector.load %arg8[%c0_16, %c0_17] : memref<1x128xf32, #tpu.memory_space<vmem>>, vector<1x128xf32>
      %c0_18 = arith.constant 0 : index
      %c0_19 = arith.constant 0 : index
      %18 = vector.load %arg9[%c0_18, %c0_19] : memref<1x128xf32, #tpu.memory_space<vmem>>, vector<1x128xf32>
      %19 = arith.mulf %17, %18 : vector<1x128xf32>
      %20 = arith.addf %16, %19 : vector<1x128xf32>
      %c0_20 = arith.constant 0 : index
      %c0_21 = arith.constant 0 : index
      %21 = vector.load %arg11[%c0_20, %c0_21] : memref<8x128xf32, #tpu.memory_space<vmem>>, vector<8x128xf32>
      %22 = vector.broadcast %20 : vector<1x128xf32> to vector<8x128xf32>
      %23 = arith.addf %21, %22 : vector<8x128xf32>
      %c0_22 = arith.constant 0 : index
      %c0_23 = arith.constant 0 : index
      %24 = vector.load %arg10[%c0_22, %c0_23] : memref<8x128xf32, #tpu.memory_space<vmem>>, vector<8x128xf32>
      tpu.vector_store %arg10[%c0_22, %c0_23], %23 {strides = array<i32>} : memref<8x128xf32, #tpu.memory_space<vmem>>, vector<8x128xf32>,
    } else {
    }
    return
  }
  func.func @transform_0(%arg0: i32, %arg1: i32, %arg2: i32) -> (i32, i32) {
    %c0_i32 = arith.constant 0 : i32
    return %arg0, %arg2 : i32, i32
  }
  func.func @transform_1(%arg0: i32, %arg1: i32, %arg2: i32) -> (i32, i32) {
    %c0_i32 = arith.constant 0 : i32
    return %arg2, %arg1 : i32, i32
  }
  func.func @transform_2(%arg0: i32, %arg1: i32, %arg2: i32) -> (i32, i32) {
    %c0_i32 = arith.constant 0 : i32
    return %arg2, %arg1 : i32, i32
  }
  func.func @transform_3(%arg0: i32, %arg1: i32, %arg2: i32) -> (i32, i32) {
    %c0_i32 = arith.constant 0 : i32
    return %arg2, %arg1 : i32, i32
  }
  func.func @transform_4(%arg0: i32, %arg1: i32, %arg2: i32) -> (i32, i32) {
    %c0_i32 = arith.constant 0 : i32
    %c0_i32_0 = arith.constant 0 : i32
    return %c0_i32, %arg1 : i32, i32
  }
  func.func @transform_5(%arg0: i32, %arg1: i32, %arg2: i32) -> (i32, i32) {
    %c0_i32 = arith.constant 0 : i32
    %c0_i32_0 = arith.constant 0 : i32
    return %c0_i32, %arg1 : i32, i32
  }
  func.func @transform_6(%arg0: i32, %arg1: i32, %arg2: i32) -> (i32, i32) {
    %c0_i32 = arith.constant 0 : i32
    %c0_i32_0 = arith.constant 0 : i32
    return %c0_i32, %arg1 : i32, i32
  }
  func.func @transform_7(%arg0: i32, %arg1: i32, %arg2: i32) -> (i32, i32) {
    %c0_i32 = arith.constant 0 : i32
    return %arg0, %arg1 : i32, i32
  }
}

</mosaic_0001>

<bundles_post_ra>
// kernel: tpu_custom_call.1
= control target key start
LH: loop header
LB: loop body
LE: loop exit
PB: predicated region body
PF: predicated region fallthrough
CT: control target
= control target key end

     0   :  { %12 = vsyncpa [#allocation4], 0  ;;  %s436_s0 = inlined_call_operand.hbm [shape: f32[8,128], index: 0, kind: input, shape index: {}]   ;;  %s437_s1 = inlined_call_operand.hbm [shape: f32[128,128], index: 1, kind: input, shape index: {}]   ;;  %s438_s2 = inlined_call_operand.hbm [shape: f32[128,128], index: 2, kind: input, shape index: {}]   ;;  %s439_s3 = inlined_call_operand.hbm [shape: f32[128,128], index: 3, kind: input, shape index: {}]   ;;  %s440_s4 = inlined_call_operand.vmem [shape: f32[1,128], index: 4, kind: input, shape index: {}]   ;;  %s441_s5 = inlined_call_operand.vmem [shape: f32[1,128], index: 5, kind: input, shape index: {}]   ;;  %s442_s6 = inlined_call_operand.vmem [shape: f32[1,128], index: 6, kind: input, shape index: {}]   ;;  %s443_s7 = inlined_call_operand.hbm [shape: f32[8,128], index: 7, kind: output, shape index: {}]  }
   0x1   :  { %13 = vsyncpa [#allocation7], 0 }
   0x2   :  { %14 = vsyncpa [#allocation10], 0  ;;  %s31_s26 = sshll.u32 %s437_s1, 4  ;;  %s32_s26 = int_to_ptr.hbm [resolvable:$true] %s31_s26 }
   0x3   :  { %15 = vsyncpa [#allocation5], 0  ;;  %s365_s27 = smov [#allocation6]   ;;  %s21_s8 = sshll.u32 %s436_s0, 4  ;;  %s22_s8 = int_to_ptr.hbm [resolvable:$true] %s21_s8 }
   0x4   :  { %s33_s28 = sshll.u32 %s365_s27, 4  ;;  %s366_s9 = smov 128   ;;  %s34_s28 = int_to_ptr.vmem [resolvable:$true] %s33_s28 }
   0x5   :  { %s367_s10 = smov 8   ;;  %s368_s11 = smov [#allocation3]  }
   0x6   :  { %39 = dma.hbm_to_vmem [thread:$0]  %s32_s26, 2048, %s34_s28, [#allocation7], %s366_s9, %s366_s9, %s367_s10  }
   0x7   :  { %s23_s12 = sshll.u32 %s368_s11, 4  ;;  %s44_s15 = sshll.u32 %s438_s2, 4  ;;  %s24_s12 = int_to_ptr.vmem [resolvable:$true] %s23_s12  ;;  %s45_s15 = int_to_ptr.hbm [resolvable:$true] %s44_s15 }
   0x8   :  { %26 = dma.hbm_to_vmem [thread:$0]  %s22_s8, 128, %s24_s12, [#allocation4]  }
   0x9   :  { %s57_s17 = sshll.u32 %s439_s3, 4  ;;  %s369_s18 = smov [#allocation8]   ;;  %s58_s17 = int_to_ptr.hbm [resolvable:$true] %s57_s17 }
   0xa   :  { %s46_s19 = sshll.u32 %s369_s18, 4  ;;  %s370_s0 = smov [#allocation9]   ;;  %s47_s19 = int_to_ptr.vmem [resolvable:$true] %s46_s19 }
   0xb   :  { %52 = dma.hbm_to_vmem [thread:$0]  %s45_s15, 2048, %s47_s19, [#allocation7], %s366_s9, %s366_s9, %s367_s10  }
   0xc   :  { %s59_s20 = sshll.u32 %s370_s0, 4  ;;  %s60_s20 = int_to_ptr.vmem [resolvable:$true] %s59_s20 }
   0xd   :  { %65 = dma.hbm_to_vmem [thread:$0]  %s58_s17, 2048, %s60_s20, [#allocation10], %s366_s9, %s366_s9, %s367_s10  }
   0xe   :  { %357 = dma.done.wait [#allocation4], 128  }
   0xf   :  { %358 = vsyncadd [#allocation4], 4294967168 }
  0x10   :  { %359 = dma.done.wait [#allocation7], 4096  }
  0x11   :  { %360 = vsyncadd [#allocation7], 4294963200 }
  0x12   :  { %361 = dma.done.wait [#allocation10], 2048  }
  0x13   :  { %362 = vsyncadd [#allocation10], 4294965248  ;;  %v108_v0 = vld [vmem:[#allocation6 + $0x78] sm:$0xff]  ;;  %v107_v4 = vld [vmem:[#allocation6 + $0x70] sm:$0xff]  ;;  %s371_s25 = smov [#allocation11]   ;;  %s218_s29 = sshll.u32 %s443_s7, 4  ;;  %s219_s29 = int_to_ptr.hbm [resolvable:$true] %s218_s29 }
  0x14   :  { %v124_v1 = vld [vmem:[#allocation8 + $0x78] sm:$0xff]  ;;  %v123_v5 = vld [vmem:[#allocation8 + $0x70] sm:$0xff]  ;;  %v106_v8 = vld [vmem:[#allocation6 + $0x68] sm:$0xff]  ;;  %s216_s26 = sshll.u32 %s371_s25, 4  ;;  %s217_s26 = int_to_ptr.vmem [resolvable:$true] %s216_s26 }
  0x15   :  { %v140_v2 = vld [vmem:[#allocation9 + $0x78] sm:$0xff]  ;;  %v139_v6 = vld [vmem:[#allocation9 + $0x70] sm:$0xff]  ;;  %v122_v9 = vld [vmem:[#allocation8 + $0x68] sm:$0xff] }
  0x16   :  { %v156_v3 = vmul.f32 %v140_v2, %v124_v1  ;;  %v155_v7 = vmul.f32 %v139_v6, %v123_v5  ;;  %v138_v10 = vld [vmem:[#allocation9 + $0x68] sm:$0xff]  ;;  %v121_v13 = vld [vmem:[#allocation8 + $0x60] sm:$0xff]  ;;  %v120_v18 = vld [vmem:[#allocation8 + $0x58] sm:$0xff] }
  0x17   :  { %v154_v12 = vmul.f32 %v138_v10, %v122_v9  ;;  %v137_v14 = vld [vmem:[#allocation9 + $0x60] sm:$0xff]  ;;  %v136_v19 = vld [vmem:[#allocation9 + $0x58] sm:$0xff]  ;;  %v119_v22 = vld [vmem:[#allocation8 + $0x50] sm:$0xff] }
  0x18   :  { %v172_v11 = vadd.f32 %v156_v3, %v108_v0  ;;  %v171_v15 = vadd.f32 %v155_v7, %v107_v4  ;;  %v105_v16 = vld [vmem:[#allocation6 + $0x60] sm:$0xff]  ;;  %v153_v17 = vmul.f32 %v137_v14, %v121_v13  ;;  %v152_v21 = vmul.f32 %v136_v19, %v120_v18  ;;  %v135_v23 = vld [vmem:[#allocation9 + $0x50] sm:$0xff]  ;;  %v104_v24 = vld [vmem:[#allocation6 + $0x58] sm:$0xff] }
  0x19   :  { %v170_v20 = vadd.f32 %v154_v12, %v106_v8  ;;  %v118_v25 = vld [vmem:[#allocation8 + $0x48] sm:$0xff]  ;;  %v151_v28 = vmul.f32 %v135_v23, %v119_v22  ;;  %v103_v29 = vld [vmem:[#allocation6 + $0x50] sm:$0xff]  ;;  %v117_v30 = vld [vmem:[#allocation8 + $0x40] sm:$0xff] }
  0x1a   :  { %175 = vmatpush.msra.mxu0 %v172_v11  ;;  %v134_v26 = vld [vmem:[#allocation9 + $0x48] sm:$0xff]  ;;  %v169_v27 = vadd.f32 %v153_v17, %v105_v16  ;;  %v133_v31 = vld [vmem:[#allocation9 + $0x40] sm:$0xff]  ;;  %v168_v32 = vadd.f32 %v152_v21, %v104_v24  ;;  %v116_v35 = vld [vmem:[#allocation8 + $0x38] sm:$0xff] }
  0x1b   :  { %v150_v33 = vmul.f32 %v134_v26, %v118_v25  ;;  %v102_v34 = vld [vmem:[#allocation6 + $0x48] sm:$0xff]  ;;  %v132_v36 = vld [vmem:[#allocation9 + $0x38] sm:$0xff]  ;;  %v167_v37 = vadd.f32 %v151_v28, %v103_v29  ;;  %v149_v38 = vmul.f32 %v133_v31, %v117_v30  ;;  %v101_v39 = vld [vmem:[#allocation6 + $0x40] sm:$0xff] }
  0x1c   :  { %176 = vmatpush.msra.mxu0 %v171_v15  ;;  %v115_v40 = vld [vmem:[#allocation8 + $0x30] sm:$0xff]  ;;  %v148_v43 = vmul.f32 %v132_v36, %v116_v35  ;;  %v100_v44 = vld [vmem:[#allocation6 + $0x38] sm:$0xff]  ;;  %v114_v45 = vld [vmem:[#allocation8 + $0x28] sm:$0xff] }
  0x1d   :  { %v131_v41 = vld [vmem:[#allocation9 + $0x30] sm:$0xff]  ;;  %v166_v42 = vadd.f32 %v150_v33, %v102_v34  ;;  %v130_v46 = vld [vmem:[#allocation9 + $0x28] sm:$0xff]  ;;  %v165_v47 = vadd.f32 %v149_v38, %v101_v39  ;;  %v113_v50 = vld [vmem:[#allocation8 + $0x20] sm:$0xff] }
  0x1e   :  { %177 = vmatpush.msra.mxu0 %v170_v20  ;;  %v147_v48 = vmul.f32 %v131_v41, %v115_v40  ;;  %v99_v49 = vld [vmem:[#allocation6 + $0x30] sm:$0xff]  ;;  %v129_v51 = vld [vmem:[#allocation9 + $0x20] sm:$0xff]  ;;  %v164_v52 = vadd.f32 %v148_v43, %v100_v44  ;;  %v146_v53 = vmul.f32 %v130_v46, %v114_v45  ;;  %v98_v54 = vld [vmem:[#allocation6 + $0x28] sm:$0xff] }
  0x1f   :  { %v112_v55 = vld [vmem:[#allocation8 + $0x18] sm:$0xff]  ;;  %v145_v58 = vmul.f32 %v129_v51, %v113_v50  ;;  %v97_v59 = vld [vmem:[#allocation6 + $0x20] sm:$0xff]  ;;  %v111_v60 = vld [vmem:[#allocation8 + $0x10] sm:$0xff] }
  0x20   :  { %178 = vmatpush.msra.mxu0 %v169_v27  ;;  %v128_v56 = vld [vmem:[#allocation9 + $0x18] sm:$0xff]  ;;  %v163_v57 = vadd.f32 %v147_v48, %v99_v49  ;;  %v127_v61 = vld [vmem:[#allocation9 + $0x10] sm:$0xff]  ;;  %v162_v62 = vadd.f32 %v146_v53, %v98_v54  ;;  %v110_v1 = vld [vmem:[#allocation8 + $0x8] sm:$0xff] }
  0x21   :  { %v144_v63 = vmul.f32 %v128_v56, %v112_v55  ;;  %v96_v0 = vld [vmem:[#allocation6 + $0x18] sm:$0xff]  ;;  %v126_v2 = vld [vmem:[#allocation9 + $0x8] sm:$0xff]  ;;  %v161_v3 = vadd.f32 %v145_v58, %v97_v59  ;;  %v143_v4 = vmul.f32 %v127_v61, %v111_v60  ;;  %v95_v5 = vld [vmem:[#allocation6 + $0x10] sm:$0xff] }
  0x22   :  { %179 = vmatpush.msra.mxu0 %v168_v32  ;;  %v109_v6 = vld [vmem:[#allocation8] sm:$0xff]  ;;  %v142_v9 = vmul.f32 %v126_v2, %v110_v1  ;;  %v94_v10 = vld [vmem:[#allocation6 + $0x8] sm:$0xff]  ;;  %v173_v16 = vld [vmem:[#allocation3] sm:$0xff] }
  0x23   :  { %v125_v7 = vld [vmem:[#allocation9] sm:$0xff]  ;;  %v160_v8 = vadd.f32 %v144_v63, %v96_v0  ;;  %v159_v11 = vadd.f32 %v143_v4, %v95_v5  ;;  %v201_v17 = vld [vmem:[%s441_s5] sm:$0x1] }
  0x24   :  { %180 = vmatpush.msra.mxu0 %v167_v37  ;;  %v141_v12 = vmul.f32 %v125_v7, %v109_v6  ;;  %v93_v13 = vld [vmem:[#allocation6] sm:$0xff]  ;;  %v158_v14 = vadd.f32 %v142_v9, %v94_v10  ;;  %v202_v18 = vld [vmem:[%s442_s6] sm:$0x1] }
  0x25   :  { %v203_v19 = vmul.f32 %v202_v18, %v201_v17  ;;  %v200_v20 = vld [vmem:[%s440_s4] sm:$0x1] }
  0x26   :  { %181 = vmatpush.msra.mxu0 %v166_v42  ;;  %v157_v15 = vadd.f32 %v141_v12, %v93_v13 }
  0x27   :  { %v204_v21 = vadd.f32 %v203_v19, %v200_v20 }
  0x28   :  { %182 = vmatpush.msra.mxu0 %v165_v47 }
  0x29   :  { %v207_v22 = vperm.slane %v204_v21, 0 }
  0x2a   :  { %183 = vmatpush.msra.mxu0 %v164_v52 }
  0x2c   :  { %184 = vmatpush.msra.mxu0 %v163_v57 }
  0x2e   :  { %185 = vmatpush.msra.mxu0 %v162_v62 }
  0x30   :  { %186 = vmatpush.msra.mxu0 %v161_v3 }
  0x32   :  { %187 = vmatpush.msra.mxu0 %v160_v8 }
  0x34   :  { %188 = vmatpush.msra.mxu0 %v159_v11 }
  0x36   :  { %189 = vmatpush.msra.mxu0 %v158_v14 }
  0x38   :  { %190 = vmatpush.msra.mxu0 %v157_v15 }
  0x39   :  { %191 = vmatmul.f32.vlgmr.msra.gmra.mxu0 %v173_v16 }
  0xb6   :  { %v192_v23 = vpop.f32.mrf.mxu0 }
  0xb7   :  { %v209_v24 = vadd.f32 %v207_v22, %v192_v23 }
  0xb9   :  { %210 = vst [vmem:[#allocation11] sm:$0xff] %v209_v24 }
  0xba   :  { %221 = dma.vmem_to_hbm [thread:$0]  %s217_s26, 128, %s219_s29, [#allocation5]  }
  0xbb   :  { %363 = dma.done.wait [#allocation5], 128  }
  0xbc   :  { %364 = vsyncadd [#allocation5], 4294967168 }
  0xbd   :  { %226 = vsyncpa [#allocation4], 1 }
  0xbe   :  { %227 = vsyncpa [#allocation7], 1 }
  0xbf   :  { %228 = vsyncpa [#allocation10], 1 }
  0xc0   :  { %229 = vsyncpa [#allocation5], 1 }

</bundles_post_ra>
